<compile_context>
chip_gen: v5e
topology: v5e:2x2
jax: 0.10.0
libtpu: 0.0.40
codegen_flags: <defaults>
</compile_context>

<pallas_src>
import numpy as np
import jax
import jax.numpy as jnp
from jax.experimental import pallas as pl
from jax.experimental.pallas import tpu as pltpu

K = 7     # spatial-attention kernel size (SpatialAttention default)
PAD = 3   # padding for kernel_size=7


def cbam_kernel(x_ref, w1t_ref, w2t_ref, mavg_ref, mmax_ref, out_ref):
    x = x_ref[...].astype(jnp.float32)              # (B, C, HW), lane-dense
    B = x.shape[0]

    def sigmoid(v):
        # exp on the EUP; approx reciprocal also runs on the EUP slot.
        return pl.reciprocal(1.0 + jnp.exp(-v), approx=True)

    # ---------------- channel attention ----------------
    avg_p = jnp.mean(x, axis=2)                     # (B, C)  adaptive avg pool
    max_p = jnp.max(x, axis=2)                      # (B, C)  adaptive max pool

    # One fused fc1 -> relu -> fc2 over both pooled matrices (halves the tiny
    # MXU pushes and doubles row occupancy).
    p = jnp.concatenate([avg_p, max_p], axis=0)     # (2B, C)
    h = jnp.maximum(
        jnp.dot(p, w1t_ref[...], preferred_element_type=jnp.float32), 0.0)
    o = jnp.dot(h, w2t_ref[...], preferred_element_type=jnp.float32)  # (2B, C)
    ca = sigmoid(o[:B] + o[B:])                     # (B, C)

    att = 1.0 + ca[:, :, None] * x                  # (B, C, HW): att = 1 + CA(x)*x

    # ---------------- spatial attention ----------------
    # Channel mean / max, cast to bf16 for a single-pass MXU matmul against
    # the bf16 Toeplitz blocks (f32 accumulation).
    avg_s = jnp.mean(att, axis=1).astype(jnp.bfloat16)    # (B, HW)
    max_s = jnp.max(att, axis=1).astype(jnp.bfloat16)     # (B, HW)
    conv = (jnp.dot(avg_s, mavg_ref[...], preferred_element_type=jnp.float32)
            + jnp.dot(max_s, mmax_ref[...], preferred_element_type=jnp.float32))
    sa = sigmoid(conv)                              # (B, HW)

    out_ref[...] = (att + sa[:, None, :]).astype(out_ref.dtype)   # att + SA(att)


def _build_spatial_conv_matrices(wsp, H, W, dtype=jnp.bfloat16):
    """Per-channel dense Toeplitz matrices for the 7x7 'same' conv.

    wsp: (1, 2, K, K) conv weight (OIHW, O=1).  Returns (M_avg, M_max), each
    (H*W, H*W), such that per image
        conv2d(cat([avg, max]), wsp, padding=3).flatten()
          == avg.flatten() @ M_avg + max.flatten() @ M_max
    """
    w = np.asarray(wsp, np.float32).reshape(2, K, K)
    HW = H * W
    M = np.zeros((2, H, W, H, W), np.float32)       # [c, y_src, x_src, y_out, x_out]
    for c in range(2):
        for ky in range(K):
            for kx in range(K):
                dy, dx = ky - PAD, kx - PAD
                ys = np.arange(max(0, -dy), min(H, H - dy))   # valid output rows
                xs = np.arange(max(0, -dx), min(W, W - dx))   # valid output cols
                if ys.size == 0 or xs.size == 0:
                    continue
                M[c, ys[:, None] + dy, xs[None, :] + dx,
                  ys[:, None], xs[None, :]] = w[c, ky, kx]
    M = M.reshape(2, HW, HW)
    return jnp.asarray(M[0], dtype), jnp.asarray(M[1], dtype)


def _choose_batch_block(N, C, HW, bytes_per_elem,
                        vmem_block_budget=32 * 2**20, max_block=128):
    """Images per grid step: as large as the VMEM budget allows (<=128)."""
    # Rough per-image footprint: double-buffered in+out pipeline copies plus
    # the f32 temporaries (x, att, store staging) live in the kernel body.
    per_image = C * HW * (4 * bytes_per_elem + 3 * 4)
    b = max(1, min(max_block, vmem_block_budget // per_image, N))
    if N >= 2:
        # Keep >= 2 grid steps so the "parallel" batch axis can shard across
        # the two TensorCores on v7x (harmless no-op on v5e/v6e).
        b = min(b, max(1, N // 2))
    return max(1, int(b))


def cbam_pallas(x, w1, w2, wsp):
    """x: (N,C,H,W); w1: (C//16, C); w2: (C, C//16); wsp: (1, 2, 7, 7)."""
    N, C, H, W = x.shape
    Ch = w1.shape[0]
    HW = H * W
    out_dtype = x.dtype

    # TODO(synk): for HW beyond ~2K the dense (HW, HW) Toeplitz blocks exceed
    # VMEM; switch to a pltpu.roll tap-accumulation conv in that regime.
    m_avg, m_max = _build_spatial_conv_matrices(wsp, H, W)   # bf16, (HW, HW) each

    B = _choose_batch_block(N, C, HW, jnp.dtype(x.dtype).itemsize)
    n_steps = int(pl.cdiv(N, B))
    n_pad = n_steps * B

    x_flat = x.reshape(N, C, HW)                    # lane-dense activations
    if n_pad != N:                                  # pad batch to a multiple of B
        x_flat = jnp.pad(x_flat, ((0, n_pad - N), (0, 0), (0, 0)))

    w1t = jnp.transpose(w1).astype(jnp.float32)     # (C, Ch)  = fc1.weight.T
    w2t = jnp.transpose(w2).astype(jnp.float32)     # (Ch, C)  = fc2.weight.T

    # Constant-index operands: fetched once, no second pipeline buffer.
    const = dict(pipeline_mode=pl.Buffered(1))

    grid_spec = pltpu.PrefetchScalarGridSpec(
        num_scalar_prefetch=0,
        grid=(n_steps,),
        in_specs=[
            pl.BlockSpec((B, C, HW), lambda b: (b, 0, 0)),
            pl.BlockSpec((C, Ch), lambda b: (0, 0), **const),
            pl.BlockSpec((Ch, C), lambda b: (0, 0), **const),
            pl.BlockSpec((HW, HW), lambda b: (0, 0), **const),
            pl.BlockSpec((HW, HW), lambda b: (0, 0), **const),
        ],
        out_specs=pl.BlockSpec((B, C, HW), lambda b: (b, 0, 0)),
    )
    out_flat = pl.pallas_call(
        cbam_kernel,
        out_shape=jax.ShapeDtypeStruct((n_pad, C, HW), out_dtype),
        grid_spec=grid_spec,
        compiler_params=pltpu.CompilerParams(
            dimension_semantics=("parallel",),
            vmem_limit_bytes=48 * 1024 * 1024,
        ),
    )(x_flat, w1t, w2t, m_avg, m_max)
    return out_flat[:N].reshape(N, C, H, W)


def cbam_ref(x, w1, w2, wsp):
    """Pure-JAX reference matching the PyTorch CBAM forward."""
    avg = x.mean(axis=(2, 3))                       # (N,C)
    mx = x.max(axis=(2, 3))                         # (N,C)

    def mlp(v):
        h = jnp.maximum(v @ w1.T, 0.0)
        return h @ w2.T

    ca = jax.nn.sigmoid(mlp(avg) + mlp(mx))         # (N,C)
    att = 1.0 + ca[:, :, None, None] * x
    avg_s = att.mean(axis=1, keepdims=True)
    max_s = att.max(axis=1, keepdims=True)
    cat = jnp.concatenate([avg_s, max_s], axis=1)   # (N,2,H,W)
    conv = jax.lax.conv_general_dilated(
        cat, wsp, window_strides=(1, 1), padding=((PAD, PAD), (PAD, PAD)),
        dimension_numbers=("NCHW", "OIHW", "NCHW"))
    sa = jax.nn.sigmoid(conv)                       # (N,1,H,W)
    return att + sa


if __name__ == "__main__":
    N, C, H, W = 2, 32, 16, 16                      # ratio is hard-coded 16 -> C >= 16
    Ch = C // 16

    key = jax.random.PRNGKey(0)
    k1, k2, k3, k4 = jax.random.split(key, 4)
    x = jax.random.normal(k1, (N, C, H, W), jnp.float32)
    # deterministic synthetic weights (Conv2d weights without trailing 1x1 dims)
    w1 = jax.random.normal(k2, (Ch, C), jnp.float32) * 0.2        # fc1: Conv2d(C, C//16, 1)
    w2 = jax.random.normal(k3, (C, Ch), jnp.float32) * 0.2        # fc2: Conv2d(C//16, C, 1)
    wsp = jax.random.normal(k4, (1, 2, K, K), jnp.float32) * 0.1  # SpatialAttention conv1

    out = cbam_pallas(x, w1, w2, wsp)
    jax.block_until_ready(out)

    ref = cbam_ref(x, w1, w2, wsp)
    # Spatial conv runs as a single-pass bf16 MXU matmul and sigmoid uses the
    # EUP approx reciprocal -> bf16-level (~1e-3..5e-3) rounding differences.
    np.testing.assert_allclose(np.asarray(out), np.asarray(ref), rtol=1e-2, atol=1e-2)
    print("KERNEL_OK")
</pallas_src>

<mosaic_0001>
module attributes {stable_mosaic.version = 11 : i64} {
  func.func @cbam_kernel(%arg0: i32, %arg1: memref<1x32x256xf32, #tpu.memory_space<vmem>>, %arg2: memref<32x2xf32, #tpu.memory_space<vmem>>, %arg3: memref<2x32xf32, #tpu.memory_space<vmem>>, %arg4: memref<256x256xbf16, #tpu.memory_space<vmem>>, %arg5: memref<256x256xbf16, #tpu.memory_space<vmem>>, %arg6: memref<1x32x256xf32, #tpu.memory_space<vmem>>) attributes {dimension_semantics = [#tpu.dimension_semantics<parallel>], iteration_bounds = array<i64: 2>, scalar_prefetch = 0 : i64, scratch_operands = 0 : i64, tpu.core_type = #tpu.core_type<tc>, window_params = [{transform_indices = @transform_0, window_bounds = array<i64: 1, 32, 256>}, {pipeline_mode = #tpu.pipeline_mode<synchronous>, transform_indices = @transform_1, window_bounds = array<i64: 32, 2>}, {pipeline_mode = #tpu.pipeline_mode<synchronous>, transform_indices = @transform_2, window_bounds = array<i64: 2, 32>}, {pipeline_mode = #tpu.pipeline_mode<synchronous>, transform_indices = @transform_3, window_bounds = array<i64: 256, 256>}, {pipeline_mode = #tpu.pipeline_mode<synchronous>, transform_indices = @transform_4, window_bounds = array<i64: 256, 256>}, {transform_indices = @transform_5, window_bounds = array<i64: 1, 32, 256>}]} {
    %c0 = arith.constant 0 : index
    %c0_0 = arith.constant 0 : index
    %c0_1 = arith.constant 0 : index
    %0 = vector.load %arg1[%c0, %c0_0, %c0_1] : memref<1x32x256xf32, #tpu.memory_space<vmem>>, vector<1x32x256xf32>
    %cst = arith.constant dense<0.000000e+00> : vector<1x32xf32>
    %1 = vector.multi_reduction <add>, %0, %cst [2] : vector<1x32x256xf32> to vector<1x32xf32>
    %cst_2 = arith.constant 2.560000e+02 : f32
    %2 = vector.broadcast %cst_2 : f32 to vector<1x32xf32>
    %3 = arith.divf %1, %2 : vector<1x32xf32>
    %cst_3 = arith.constant dense<0xFF800000> : vector<1x32xf32>
    %4 = vector.multi_reduction <maximumf>, %0, %cst_3 [2] : vector<1x32x256xf32> to vector<1x32xf32>
    %5 = tpu.concatenate %3, %4 in 0 : vector<1x32xf32>, vector<1x32xf32> -> vector<2x32xf32>
    %c0_4 = arith.constant 0 : index
    %c0_5 = arith.constant 0 : index
    %6 = vector.load %arg2[%c0_4, %c0_5] : memref<32x2xf32, #tpu.memory_space<vmem>>, vector<32x2xf32>
    %cst_6 = arith.constant dense<0.000000e+00> : vector<2x2xf32>
    %7 = tpu.matmul %5, %6, %cst_6 {dimension_numbers = #tpu.dot_dimension_numbers<[1], [0], [0], [1], [0, 0, 1, 1], [], []>} : vector<2x32xf32>, vector<32x2xf32>, vector<2x2xf32> -> vector<2x2xf32>
    %cst_7 = arith.constant 0.000000e+00 : f32
    %8 = vector.broadcast %cst_7 : f32 to vector<2x2xf32>
    %9 = arith.maximumf %7, %8 : vector<2x2xf32>
    %c0_8 = arith.constant 0 : index
    %c0_9 = arith.constant 0 : index
    %10 = vector.load %arg3[%c0_8, %c0_9] : memref<2x32xf32, #tpu.memory_space<vmem>>, vector<2x32xf32>
    %cst_10 = arith.constant dense<0.000000e+00> : vector<2x32xf32>
    %11 = tpu.matmul %9, %10, %cst_10 {dimension_numbers = #tpu.dot_dimension_numbers<[1], [0], [0], [1], [0, 0, 1, 1], [], []>} : vector<2x2xf32>, vector<2x32xf32>, vector<2x32xf32> -> vector<2x32xf32>
    %12 = vector.extract_strided_slice %11 {offsets = [0, 0], sizes = [1, 32], strides = [1, 1]} : vector<2x32xf32> to vector<1x32xf32>
    %13 = vector.extract_strided_slice %11 {offsets = [1, 0], sizes = [1, 32], strides = [1, 1]} : vector<2x32xf32> to vector<1x32xf32>
    %14 = arith.addf %12, %13 : vector<1x32xf32>
    %cst_11 = arith.constant 0.000000e+00 : f32
    %15 = vector.broadcast %cst_11 : f32 to vector<1x32xf32>
    %16 = arith.subf %15, %14 : vector<1x32xf32>
    %17 = math.exp %16 : vector<1x32xf32>
    %cst_12 = arith.constant 1.000000e+00 : f32
    %18 = vector.broadcast %cst_12 : f32 to vector<1x32xf32>
    %19 = arith.addf %18, %17 : vector<1x32xf32>
    %20 = tpu.reciprocal %19 {approx = true} : vector<1x32xf32> -> vector<1x32xf32>
    %21 = vector.shape_cast %20 : vector<1x32xf32> to vector<1x32x1xf32>
    %22 = vector.broadcast %21 : vector<1x32x1xf32> to vector<1x32x256xf32>
    %23 = arith.mulf %22, %0 : vector<1x32x256xf32>
    %cst_13 = arith.constant 1.000000e+00 : f32
    %24 = vector.broadcast %cst_13 : f32 to vector<1x32x256xf32>
    %25 = arith.addf %24, %23 : vector<1x32x256xf32>
    %cst_14 = arith.constant dense<0.000000e+00> : vector<1x256xf32>
    %26 = vector.multi_reduction <add>, %25, %cst_14 [1] : vector<1x32x256xf32> to vector<1x256xf32>
    %cst_15 = arith.constant 3.200000e+01 : f32
    %27 = vector.broadcast %cst_15 : f32 to vector<1x256xf32>
    %28 = arith.divf %26, %27 : vector<1x256xf32>
    %29 = arith.truncf %28 : vector<1x256xf32> to vector<1x256xbf16>
    %cst_16 = arith.constant dense<0xFF800000> : vector<1x256xf32>
    %30 = vector.multi_reduction <maximumf>, %25, %cst_16 [1] : vector<1x32x256xf32> to vector<1x256xf32>
    %31 = arith.truncf %30 : vector<1x256xf32> to vector<1x256xbf16>
    %c0_17 = arith.constant 0 : index
    %c0_18 = arith.constant 0 : index
    %32 = vector.load %arg4[%c0_17, %c0_18] : memref<256x256xbf16, #tpu.memory_space<vmem>>, vector<256x256xbf16>
    %cst_19 = arith.constant dense<0.000000e+00> : vector<1x256xf32>
    %33 = tpu.matmul %29, %32, %cst_19 {dimension_numbers = #tpu.dot_dimension_numbers<[1], [0], [0], [1], [0, 0, 1, 1], [], []>} : vector<1x256xbf16>, vector<256x256xbf16>, vector<1x256xf32> -> vector<1x256xf32>
    %c0_20 = arith.constant 0 : index
    %c0_21 = arith.constant 0 : index
    %34 = vector.load %arg5[%c0_20, %c0_21] : memref<256x256xbf16, #tpu.memory_space<vmem>>, vector<256x256xbf16>
    %cst_22 = arith.constant dense<0.000000e+00> : vector<1x256xf32>
    %35 = tpu.matmul %31, %34, %cst_22 {dimension_numbers = #tpu.dot_dimension_numbers<[1], [0], [0], [1], [0, 0, 1, 1], [], []>} : vector<1x256xbf16>, vector<256x256xbf16>, vector<1x256xf32> -> vector<1x256xf32>
    %36 = arith.addf %33, %35 : vector<1x256xf32>
    %cst_23 = arith.constant 0.000000e+00 : f32
    %37 = vector.broadcast %cst_23 : f32 to vector<1x256xf32>
    %38 = arith.subf %37, %36 : vector<1x256xf32>
    %39 = math.exp %38 : vector<1x256xf32>
    %cst_24 = arith.constant 1.000000e+00 : f32
    %40 = vector.broadcast %cst_24 : f32 to vector<1x256xf32>
    %41 = arith.addf %40, %39 : vector<1x256xf32>
    %42 = tpu.reciprocal %41 {approx = true} : vector<1x256xf32> -> vector<1x256xf32>
    %43 = vector.shape_cast %42 : vector<1x256xf32> to vector<1x1x256xf32>
    %44 = vector.broadcast %43 : vector<1x1x256xf32> to vector<1x32x256xf32>
    %45 = arith.addf %25, %44 : vector<1x32x256xf32>
    %c0_25 = arith.constant 0 : index
    %c0_26 = arith.constant 0 : index
    %c0_27 = arith.constant 0 : index
    %46 = vector.load %arg6[%c0_25, %c0_26, %c0_27] : memref<1x32x256xf32, #tpu.memory_space<vmem>>, vector<1x32x256xf32>
    tpu.vector_store %arg6[%c0_25, %c0_26, %c0_27], %45 {strides = array<i32>} : memref<1x32x256xf32, #tpu.memory_space<vmem>>, vector<1x32x256xf32>,
    return
  }
  func.func @transform_0(%arg0: i32) -> (i32, i32, i32) {
    %c0_i32 = arith.constant 0 : i32
    %c0_i32_0 = arith.constant 0 : i32
    %c0_i32_1 = arith.constant 0 : i32
    return %arg0, %c0_i32, %c0_i32_0 : i32, i32, i32
  }
  func.func @transform_1(%arg0: i32) -> (i32, i32) {
    %c0_i32 = arith.constant 0 : i32
    %c0_i32_0 = arith.constant 0 : i32
    %c0_i32_1 = arith.constant 0 : i32
    return %c0_i32, %c0_i32_0 : i32, i32
  }
  func.func @transform_2(%arg0: i32) -> (i32, i32) {
    %c0_i32 = arith.constant 0 : i32
    %c0_i32_0 = arith.constant 0 : i32
    %c0_i32_1 = arith.constant 0 : i32
    return %c0_i32, %c0_i32_0 : i32, i32
  }
  func.func @transform_3(%arg0: i32) -> (i32, i32) {
    %c0_i32 = arith.constant 0 : i32
    %c0_i32_0 = arith.constant 0 : i32
    %c0_i32_1 = arith.constant 0 : i32
    return %c0_i32, %c0_i32_0 : i32, i32
  }
  func.func @transform_4(%arg0: i32) -> (i32, i32) {
    %c0_i32 = arith.constant 0 : i32
    %c0_i32_0 = arith.constant 0 : i32
    %c0_i32_1 = arith.constant 0 : i32
    return %c0_i32, %c0_i32_0 : i32, i32
  }
  func.func @transform_5(%arg0: i32) -> (i32, i32, i32) {
    %c0_i32 = arith.constant 0 : i32
    %c0_i32_0 = arith.constant 0 : i32
    %c0_i32_1 = arith.constant 0 : i32
    return %arg0, %c0_i32, %c0_i32_0 : i32, i32, i32
  }
}

</mosaic_0001>

<bundles_post_ra>
// kernel: tpu_custom_call.1
= control target key start
LH: loop header
LB: loop body
LE: loop exit
PB: predicated region body
PF: predicated region fallthrough
CT: control target
= control target key end

     0   :  { %10 = vsyncpa [#allocation3], 0  ;;  %s2017_s0 = inlined_call_operand.hbm [shape: f32[2,32,256], index: 0, kind: input, shape index: {}]   ;;  %s2018_s1 = inlined_call_operand.vmem [shape: f32[32,2], index: 1, kind: input, shape index: {}]   ;;  %s2019_s2 = inlined_call_operand.vmem [shape: f32[2,32], index: 2, kind: input, shape index: {}]   ;;  %s2020_s3 = inlined_call_operand.hbm [shape: bf16[256,256], index: 3, kind: input, shape index: {}]   ;;  %s2021_s4 = inlined_call_operand.hbm [shape: bf16[256,256], index: 4, kind: input, shape index: {}]   ;;  %s2022_s5 = inlined_call_operand.hbm [shape: f32[2,32,256], index: 5, kind: output, shape index: {}]  }
   0x1   :  { %12 = vsyncpa [#allocation3 + $0x1], 0 }
   0x2   :  { %13 = vsyncpa [#allocation6], 0 }
   0x3   :  { %14 = vsyncpa [#allocation4], 0 }
   0x4   :  { %16 = vsyncpa [#allocation4 + $0x1], 0  ;;  %s1777_s18 = smov 0   ;;  %s1779_s19 = smov 0  }
   0x5   :  { %s1781_s20 = smov 0   ;;  %s1783_s21 = smov 0  }
   0x6 LB: > { %s1798_s22 = sadd.s32 4294967295, %s1735_s21   ;;  %s1136_s23 = sadd.s32 4294967294, %s1735_s21   ;;  %s1735_s21 = sphi %s1783_s21, %s2032_s21   ;;  %s1731_s20 = sphi %s1781_s20, %s2031_s20   ;;  %s1727_s19 = sphi %s1779_s19, %s2030_s19   ;;  %s1723_s18 = sphi %s1777_s18, %s2029_s18  }
   0x7   : > { %p42_p0 = scmp.ne.s32.totalorder %s1727_s19, %s1723_s18  ;;  %p43_p1 = scmp.eq.s32.totalorder %s1798_s22, 0 }
   0x8   : > { %p150_p2 = scmp.eq.s32.totalorder %s1798_s22, 1  ;;  %p156_p3 = scmp.eq.s32.totalorder %s1136_s23, 1 }
   0x9   : > { %p1807_p4 = por %p43_p1, %p42_p0  ;;  %p1137_p5 = scmp.ge.s32.totalorder %s1735_s21, 1 }
   0xa   : > { %p1812_p6 = por %p156_p3, %p42_p0  ;;  %p163_p7 = scmp.lt.s32.totalorder %s1735_s21, 3 }
   0xb   : > { %s180_s28 = sshll.u32 %s2020_s3, 4  ;;  %s1737_s30 = smov [#allocation5]   ;;  %s181_s28 = int_to_ptr.hbm [resolvable:$true] %s180_s28 }
   0xc   : > { %p1820_p8 = pnand %p1137_p5, %p163_p7  ;;  %s182_s6 = sshll.u32 %s1737_s30, 4  ;;  %s183_s6 = int_to_ptr.vmem [resolvable:$true] %s182_s6 }
   0xd   : > { %s194_s9 = sshll.u32 %s2021_s4, 4  ;;  %s1738_s10 = smov 128   ;;  %s195_s9 = int_to_ptr.hbm [resolvable:$true] %s194_s9 }
   0xe   : > { %p1491_p9 = pneg %p1820_p8  ;;  %s1739_s11 = smov 8  }
   0xf   : > { %s1740_s12 = smov [#allocation7]   ;;  %s1833_s14 = sadd.s32 1, %s1735_s21  }
  0x10   : > { %p1492_p10 = pnand %p1491_p9, %p43_p1  ;;  %s196_s13 = sshll.u32 %s1740_s12, 4  ;;  %s197_s13 = int_to_ptr.vmem [resolvable:$true] %s196_s13 }
  0x11   : > { %s29_s15 = sadd.s32 1, %s1731_s20  ;;  %s26_s16 = ssub.s32 %s1735_s21, %s1833_s14 }
  0x12   : > { %1494 = dma.hbm_to_vmem [thread:$0]  (!%p1492_p10), %s181_s28, 4096, %s183_s6, [#allocation6], %s1738_s10, %s1738_s10, %s1739_s11  }
  0x13   : > { %1497 = dma.hbm_to_vmem [thread:$0]  (!%p1492_p10), %s195_s9, 4096, %s197_s13, [#allocation6], %s1738_s10, %s1738_s10, %s1739_s11  }
  0x14   : > { %p36_p12 = scmp.ne.s32.totalorder %s1731_s20, %s1727_s19  ;;  %p27_p13 = scmp.eq.s32.totalorder %s26_s16, 0 }
  0x15   : > { %p37_p0 = scmp.eq.s32.totalorder %s1735_s21, 0  ;;  %p1508_p5 = scmp.lt.s32.totalorder %s1735_s21, 2 }
  0x16   : > { %p1843_p3 = por %p150_p2, %p36_p12  ;;  %s210_s26 = sand.u32 1, %s1731_s20  }
  0x17   : > { %s1849_s23 = scalar_select %p27_p13, %s1731_s20, %s29_s15  }
  0x18   : > { %p38_p7 = por %p37_p0, %p36_p12  ;;  %s1141_s27 = sshll.u32 %s210_s26, 6 }
  0x19   : > { %s1413_s28 = sshll.u32 %s1735_s21, 6  ;;  %s214_s8 = scalar_lea.vmem [#allocation2], %s1141_s27 }
  0x1a   : > { %s219_s7 = scalar_lea.hbm %s2017_s0, %s1413_s28  ;;  %s222_s9 = sshll.u32 %s214_s8, 4  ;;  %s223_s9 = int_to_ptr.vmem [resolvable:$true] %s222_s9 }
  0x1b   : > { %s220_s10 = sshll.u32 %s219_s7, 4  ;;  %p1856_p2 = pnand %p1508_p5, %p38_p7  ;;  %s221_s10 = int_to_ptr.hbm [resolvable:$true] %s220_s10 }
  0x1c   : > { %s211_s12 = scalar_lea.sflag [#allocation3], %s210_s26  ;;  %s1635_s13 = sshra.s32 %s221_s10, 4  ;;  %s1636_s13 = int_to_ptr.hbm [resolvable:$true] %s1635_s13 }
  0x1d   : > { %s1637_s15 = scalar_lea.hbm %s1636_s13, 64  ;;  %p1639_p10 = pneg %p1856_p2 }
  0x1e   : > { %p1638_p9 = scmp.ne.s32.totalorder %s1636_s13, %s1637_s15  ;;  %s1642_s28 = scalar_lea.hbm %s2017_s0, 128 }
  0x1f   : > { %p1643_p0 = scmp.lt.s32.totalorder %s1636_s13, %s2017_s0  ;;  %p1644_p5 = scmp.lt.s32.totalorder %s1642_s28, %s1637_s15 }
  0x20   : > { %p1640_p12 = pnand %p1639_p10, %p1638_p9 }
  0x21   : > { %p1645_p7 = por %p1644_p5, %p1643_p0 }
  0x22   : > { %p1641_p13 = pneg %p1640_p12 }
  0x24   : > { %p1646_p11 = pnand %p1645_p7, %p1641_p13 }
  0x26   : > { %1649 = shalt.err (!%p1646_p11)
}
  0x27   : > { %s1741_s26 = smov 256   ;;  %s1742_s7 = smov 16  }
  0x28   : > { %1501 = dma.hbm_to_vmem [thread:$0]  (!%p1856_p2), %s221_s10, 1024, %s223_s9, %s211_s12, %s1741_s26, %s1741_s26, %s1742_s7  }
  0x29   : > { %234 = sbr.rel (%p1820_p8) target bundleno = 790 (0x316), region = 40  ;;  %s1873_s8 = sand.u32 (!%p1820_p8), 1, %s1727_s19  }
  0x2a   : > { %s1145_s13 = sshll.u32 (!%p1820_p8), %s1873_s8, 6  ;;  %s237_s15 = scalar_lea.sflag (!%p1820_p8), [#allocation3], %s1873_s8 }
  0x2b   : > { %s240_s16 = scalar_lea.vmem (!%p1820_p8), [#allocation2], %s1145_s13 }
  0x2e   : > { %1710 = dma.done.wait (%p1807_p4), %s237_s15, 1024  }
  0x2f   : > { %1712 = vsyncadd (%p1807_p4), %s237_s15, 4294966272 }
  0x30   : > { %1714 = dma.done.wait (%p43_p1), [#allocation6], 8192  }
  0x31   : > { %1716 = vsyncadd (%p43_p1), [#allocation6], 4294959104  ;;  %v1887_v0 = vld [vmem:[%s240_s16] sm:$0xff]  ;;  %v1889_v1 = vld [vmem:[%s240_s16 + $0x8] sm:$0xff]  ;;  %v1743_v16 = vmov 256.0   ;;  %v325_v29 = vlaneseq  ;;  %vm330_vm1 = vcmask 130112  }
  0x32   : > { %v1891_v2 = vld [vmem:[%s240_s16 + $0x20] sm:$0xff]  ;;  %v309_v3 = vmax.f32 %v1887_v0, %v1889_v1  ;;  %v286_v4 = vadd.f32 %v1889_v1, %v1887_v0  ;;  %v1897_v5 = vld [vmem:[%s240_s16 + $0x28] sm:$0xff]  ;;  %v1901_v7 = vld [vmem:[%s240_s16 + $0x10] sm:$0xff]  ;;  %1559 = vrcp.f32 %v1743_v16  ;;  %vm334_vm2 = vcmask 195712   ;;  %s1478_s26 = sshll.u32 %s1798_s22, 6  ;;  %s277_s24 = scalar_lea.vmem [#allocation8], %s1145_s13 }
  0x33   : > { %v292_v6 = vadd.f32 %v1897_v5, %v1891_v2  ;;  %v1903_v8 = vld [vmem:[%s240_s16 + $0x18] sm:$0xff]  ;;  %v1905_v9 = vld [vmem:[%s240_s16 + $0x30] sm:$0xff]  ;;  %v315_v14 = vmax.f32 %v1891_v2, %v1897_v5  ;;  %v356_v20 = vld [vmem:[%s2018_s1 + $0x8] sm:$0xff]  ;;  %v326_v31 = vand.u32 127, %v325_v29  ;;  %vm338_vm3 = vcmask 261312   ;;  %s1041_s22 = sshll.u32 %s277_s24, 4  ;;  %s1042_s22 = int_to_ptr.vmem [resolvable:$true] %s1041_s22 }
  0x34   : > { %310 = vmax.xlane.f32.xlu2 %v309_v3  ;;  %287 = vadd.xlane.f32.xlu0 %v286_v4  ;;  %v1907_v10 = vld [vmem:[%s240_s16 + $0x38] sm:$0xff]  ;;  %v312_v11 = vmax.f32 %v1901_v7, %v1903_v8  ;;  %v289_v12 = vadd.f32 %v1903_v8, %v1901_v7  ;;  %v357_v18 = vld [vmem:[%s2018_s1 + $0x10] sm:$0xff]  ;;  %v355_v21 = vld [vmem:[%s2018_s1] sm:$0xff]  ;;  %vm353_vm4 = vcmask 1040384   ;;  %vm359_vm5 = vcmask 261120   ;;  %s1040_s16 = scalar_lea.hbm %s2022_s5, %s1478_s26  ;;  %s1029_s13 = scalar_lea.sflag [#allocation4], %s1873_s8 }
  0x35   : > { %293 = vadd.xlane.f32.xlu1 %v292_v6  ;;  %v295_v13 = vadd.f32 %v1907_v10, %v1905_v9  ;;  %v318_v15 = vmax.f32 %v1905_v9, %v1907_v10  ;;  %v358_v17 = vld [vmem:[%s2018_s1 + $0x18] sm:$0xff]  ;;  %v328_v34 = vadd.s32 4294967288, %v326_v31  ;;  %v332_v37 = vadd.s32 4294967280, %v326_v31  ;;  %v384_v59 = vld [vmem:[%s2019_s2] sm:$0x3]  ;;  %s1043_s29 = sshll.u32 %s1040_s16, 4  ;;  %s1044_s29 = int_to_ptr.hbm [resolvable:$true] %s1043_s29 }
  0x36   : > { %375 = vmatpush.msra.mxu0 %v358_v17  ;;  %v336_v42 = vadd.s32 4294967272, %v326_v31  ;;  %vm389_vm6 = vcmask 1041408   ;;  %vm385_vm7 = vcmask 15360   ;;  %v424_v62 = vshrl.u32 %v325_v29, 7  ;;  %v1276_v29 = vld [vmem:[#allocation7 + $0xf8] sm:$0xf0] }
  0x37   : > { %1150 = vmatpush.msk.msra.mxu1 %vm389_vm6, %v384_v59  ;;  %v1454_v59 = vld [vmem:[#allocation7 + $0x44] sm:$0xf]  ;;  %s1679_s9 = sshra.s32 %s1044_s29, 4  ;;  %s1685_s27 = scalar_lea.hbm %s2022_s5, 128  ;;  %s1680_s9 = int_to_ptr.hbm [resolvable:$true] %s1679_s9 }
  0x38   : > { %376 = vmatpush.msra.mxu0 %v357_v18  ;;  %v1560_v19 = vpop.eup %1559  ;;  %1554 = vset.pattern.permute.xlu2 %v424_v62  ;;  %v437_v63 = vadd.s32 16, %v424_v62  ;;  %v431_v3 = vadd.s32 8, %v424_v62  ;;  %v443_v18 = vadd.s32 24, %v424_v62  ;;  %v1252_v62 = vld [vmem:[#allocation7 + $0xc8] sm:$0xf0]  ;;  %s1681_s10 = scalar_lea.hbm %s1680_s9, 64  ;;  %p1686_p11 = scmp.lt.s32.totalorder %s1680_s9, %s2022_s5 }
  0x39   : > { %v299_v22 = vmul.f32 256.0, %v1560_v19  ;;  %vm303_vm0 = vweird.f32 %v1560_v19  ;;  %p1682_p1 = scmp.ne.s32.totalorder %s1680_s9, %s1681_s10  ;;  %p1687_p2 = scmp.lt.s32.totalorder %s1685_s27, %s1681_s10 }
  0x3a   : > { %377 = vmatpush.msra.mxu0 %v356_v20  ;;  %1556 = vset.pattern.permute.xlu1 %v437_v63  ;;  %v1461_v20 = vld [vmem:[#allocation7 + $0x74] sm:$0xf0] }
  0x3b   : > { %v300_v23 = vsub.f32 1.0, %v299_v22  ;;  %1555 = vset.pattern.permute.xlu0 %v431_v3  ;;  %p1683_p4 = pnand %p1682_p1, %p1843_p3  ;;  %p1688_p9 = por %p1687_p2, %p1686_p11 }
  0x3c   : > { %313 = vmax.xlane.f32.xlu2 %v312_v11  ;;  %290 = vadd.xlane.f32.xlu0 %v289_v12 }
  0x3d   : > { %296 = vadd.xlane.f32.xlu1 %v295_v13  ;;  %378 = vmatpush.msra.mxu0 %v355_v21  ;;  %v301_v24 = vmul.f32 %v1560_v19, %v300_v23  ;;  %v1274_v21 = vld [vmem:[#allocation7 + $0xf0] sm:$0xf]  ;;  %v1477_v23 = vld [vmem:[#allocation7 + $0xf4] sm:$0xf0]  ;;  %p1684_p8 = pneg %p1683_p4 }
  0x3f   : > { %v302_v27 = vadd.f32 %v1560_v19, %v301_v24  ;;  %v1460_v24 = vld [vmem:[#allocation7 + $0x74] sm:$0xf]  ;;  %p1689_p10 = pnand %p1688_p9, %p1684_p8 }
  0x41   : > { %v304_v30 = vsel %vm303_vm0, %v1560_v19, %v302_v27  ;;  %v1210_v19 = vld [vmem:[#allocation7 + $0x70] sm:$0xf] }
  0x42   : > { %v1211_v22 = vor.u32 %v1461_v20, %v1210_v19  ;;  %v1468_v20 = vld [vmem:[#allocation7 + $0xb4] sm:$0xf] }
  0x44   : > { %316 = vmax.xlane.f32.xlu0 %v315_v14  ;;  %736 = vmatpush.bf16.msra.mxu2 %v1211_v22 }
  0x45   : > { %319 = vmax.xlane.f32.xlu1 %v318_v15 }
  0xa7   : > { %v288_v25 = vpop.xlane.xlu0 %287  ;;  %v311_v26 = vpop.xlane.xlu2 %310 }
  0xa8   : > { %v294_v28 = vpop.xlane.xlu1 %293  ;;  %v305_v32 = vmul.f32 %v304_v30, %v288_v25  ;;  %v345_v44 = vperm.slane %v311_v26, %v326_v31  ;;  %v1212_v25 = vld [vmem:[#allocation7 + $0x78] sm:$0xf0]  ;;  %v1275_v26 = vor.u32 %v1477_v23, %v1274_v21  ;;  %v1170_v23 = vld [vmem:[#allocation7 + $0x20] sm:$0xf] }
  0xa9   : > { %v307_v38 = vmul.f32 %v304_v30, %v294_v28  ;;  %v1215_v27 = vor.u32 %v1460_v24, %v1212_v25  ;;  %v1476_v28 = vld [vmem:[#allocation7 + $0xf4] sm:$0xf]  ;;  %v1244_v21 = vld [vmem:[#allocation7 + $0xb8] sm:$0xf0]  ;;  %v1451_v24 = vld [vmem:[#allocation7 + $0x24] sm:$0xf0] }
  0xaa   : > { %v327_v41 = vperm.slane %v305_v32, %v326_v31  ;;  %v1202_v31 = vld [vmem:[#allocation7 + $0x60] sm:$0xf]  ;;  %v1459_v32 = vld [vmem:[#allocation7 + $0x64] sm:$0xf0]  ;;  %749 = vmatpush.bf16.msra.mxu3 %v1275_v26  ;;  %v1247_v22 = vor.u32 %v1468_v20, %v1244_v21  ;;  %v1171_v26 = vor.u32 %v1451_v24, %v1170_v23  ;;  %v1426_v20 = vld [vmem:[#allocation5 + $0x64] sm:$0xf] }
  0xab   : > { %v333_v47 = vperm.slane %v307_v38, %v332_v37  ;;  %762 = vmatpush.bf16.msrb.mxu1 %v1215_v27  ;;  %v1234_v25 = vld [vmem:[#allocation7 + $0xa0] sm:$0xf]  ;;  %v1467_v27 = vld [vmem:[#allocation7 + $0xa4] sm:$0xf0]  ;;  %v1442_v23 = vld [vmem:[#allocation5 + $0xe4] sm:$0xf] }
  0xaf   : > { %v291_v33 = vpop.xlane.xlu0 %290  ;;  %v314_v39 = vpop.xlane.xlu2 %313 }
  0xb0   : > { %v306_v35 = vmul.f32 %v304_v30, %v291_v33  ;;  %v297_v36 = vpop.xlane.xlu1 %296  ;;  %v346_v45 = vperm.slane %v314_v39, %v328_v34  ;;  %v1266_v33 = vld [vmem:[#allocation7 + $0xe0] sm:$0xf] }
  0xb1   : > { %v308_v43 = vmul.f32 %v304_v30, %v297_v36  ;;  %v1279_v30 = vor.u32 %v1476_v28, %v1276_v29  ;;  %v1458_v36 = vld [vmem:[#allocation7 + $0x64] sm:$0xf]  ;;  %v1172_v29 = vld [vmem:[#allocation7 + $0x28] sm:$0xf0] }
  0xb2   : > { %v329_v40 = vperm.slane %v306_v35, %v328_v34  ;;  %v347_v53 = vsel %vm330_vm1, %v346_v45, %v345_v44  ;;  %v1203_v34 = vor.u32 %v1459_v32, %v1202_v31  ;;  %v1475_v35 = vld [vmem:[#allocation7 + $0xe4] sm:$0xf0]  ;;  %v1457_v44 = vld [vmem:[#allocation7 + $0x54] sm:$0xf0]  ;;  %v1258_v45 = vld [vmem:[#allocation7 + $0xd0] sm:$0xf] }
  0xb3   : > { %v337_v48 = vperm.slane %v308_v43, %v336_v42  ;;  %775 = vmatpush.bf16.msrb.mxu0 %v1279_v30  ;;  %v1267_v38 = vor.u32 %v1475_v35, %v1266_v33  ;;  %v1450_v28 = vld [vmem:[#allocation7 + $0x24] sm:$0xf]  ;;  %v1235_v30 = vor.u32 %v1467_v27, %v1234_v25  ;;  %v1236_v33 = vld [vmem:[#allocation7 + $0xa8] sm:$0xf0]  ;;  %v1162_v35 = vld [vmem:[#allocation7 + $0x10] sm:$0xf] }
  0xb4   : > { %v331_v46 = vsel %vm330_vm1, %v329_v40, %v327_v41  ;;  %v1474_v40 = vld [vmem:[#allocation7 + $0xe4] sm:$0xf]  ;;  %v1268_v41 = vld [vmem:[#allocation7 + $0xe8] sm:$0xf0]  ;;  %737 = vmatpush.bf16.msra.mxu2 %v1203_v34  ;;  %v1175_v31 = vor.u32 %v1450_v28, %v1172_v29  ;;  %v1425_v27 = vld [vmem:[#allocation5 + $0x54] sm:$0xf0] }
  0xb5   : > { %v335_v52 = vsel %vm334_vm2, %v333_v47, %v331_v46  ;;  %v1271_v43 = vor.u32 %v1474_v40, %v1268_v41  ;;  %v1473_v46 = vld [vmem:[#allocation7 + $0xd4] sm:$0xf0]  ;;  %750 = vmatpush.bf16.msra.mxu3 %v1267_v38  ;;  %v1466_v32 = vld [vmem:[#allocation7 + $0xa4] sm:$0xf]  ;;  %v1448_v40 = vld [vmem:[#allocation7 + $0x14] sm:$0xf] }
  0xb6   : > { %v339_v56 = vsel %vm338_vm3, %v337_v48, %v335_v52  ;;  %v1456_v48 = vld [vmem:[#allocation7 + $0x54] sm:$0xf]  ;;  %v1239_v34 = vor.u32 %v1466_v32, %v1236_v33  ;;  %v1164_v41 = vld [vmem:[#allocation7 + $0x18] sm:$0xf0]  ;;  %v1396_v25 = vld [vmem:[#allocation5 + $0xe8] sm:$0xf0] }
  0xb7   : > { %v317_v49 = vpop.xlane.xlu0 %316  ;;  %776 = vmatpush.bf16.msrb.mxu0 %v1271_v43  ;;  %v1167_v43 = vor.u32 %v1448_v40, %v1164_v41  ;;  %v1399_v28 = vor.u32 %v1442_v23, %v1396_v25  ;;  %v1386_v29 = vld [vmem:[#allocation5 + $0xd0] sm:$0xf]  ;;  %v1378_v40 = vld [vmem:[#allocation5 + $0xc0] sm:$0xf]  ;;  %v1417_v23 = vld [vmem:[#allocation5 + $0x14] sm:$0xf0] }
  0xb8   : > { %v348_v50 = vperm.slane %v317_v49, %v332_v37  ;;  %v320_v51 = vpop.xlane.xlu1 %319  ;;  %v1204_v37 = vld [vmem:[#allocation7 + $0x68] sm:$0xf0]  ;;  %v1196_v49 = vld [vmem:[#allocation7 + $0x58] sm:$0xf0]  ;;  %v1433_v25 = vld [vmem:[#allocation5 + $0x94] sm:$0xf0] }
  0xb9   : > { %v350_v54 = vperm.slane %v320_v51, %v336_v42  ;;  %v1207_v39 = vor.u32 %v1458_v36, %v1204_v37  ;;  %v1194_v42 = vld [vmem:[#allocation7 + $0x50] sm:$0xf]  ;;  %v1259_v51 = vor.u32 %v1473_v46, %v1258_v45  ;;  %v1199_v52 = vor.u32 %v1456_v48, %v1196_v49  ;;  %v1449_v36 = vld [vmem:[#allocation7 + $0x14] sm:$0xf0]  ;;  %v1228_v45 = vld [vmem:[#allocation7 + $0x98] sm:$0xf0] }
  0xba   : > { %v349_v55 = vsel %vm334_vm2, %v348_v50, %v347_v53  ;;  %v1195_v47 = vor.u32 %v1457_v44, %v1194_v42  ;;  %v1472_v50 = vld [vmem:[#allocation7 + $0xd4] sm:$0xf]  ;;  %v1260_v53 = vld [vmem:[#allocation7 + $0xd8] sm:$0xf0]  ;;  %v1226_v37 = vld [vmem:[#allocation7 + $0x90] sm:$0xf]  ;;  %v1163_v38 = vor.u32 %v1449_v36, %v1162_v35 }
  0xbb   : > { %v351_v57 = vsel %vm338_vm3, %v350_v54, %v349_v55  ;;  %763 = vmatpush.bf16.msrb.mxu1 %v1207_v39  ;;  %v1186_v54 = vld [vmem:[#allocation7 + $0x40] sm:$0xf]  ;;  %v1455_v55 = vld [vmem:[#allocation7 + $0x44] sm:$0xf0]  ;;  %751 = vmatpush.bf16.msra.mxu3 %v1259_v51  ;;  %v1465_v39 = vld [vmem:[#allocation7 + $0x94] sm:$0xf0] }
  0xbc   : > { %v354_v58 = vsel %vm353_vm4, %v339_v56, %v351_v57  ;;  %v1263_v56 = vor.u32 %v1472_v50, %v1260_v53  ;;  %v1250_v57 = vld [vmem:[#allocation7 + $0xc0] sm:$0xf]  ;;  %738 = vmatpush.bf16.msra.mxu2 %v1195_v47  ;;  %v1187_v63 = vor.u32 %v1455_v55, %v1186_v54  ;;  %v1227_v42 = vor.u32 %v1465_v39, %v1226_v37  ;;  %v1464_v44 = vld [vmem:[#allocation7 + $0x94] sm:$0xf]  ;;  %v1447_v48 = vld [vmem:[#allocation7 + $0x4] sm:$0xf0] }
  0xbd   : > { %1149 = vmatmul.msk.f32.vlgmr.msra.gmra.mxu0 %vm359_vm5, %v354_v58  ;;  %v1471_v58 = vld [vmem:[#allocation7 + $0xc4] sm:$0xf0]  ;;  %v1231_v46 = vor.u32 %v1464_v44, %v1228_v45  ;;  %v1154_v47 = vld [vmem:[#allocation7] sm:$0xf]  ;;  %v1156_v53 = vld [vmem:[#allocation7 + $0x8] sm:$0xf0] }
  0xbe   : > { %v1251_v3 = vor.u32 %v1471_v58, %v1250_v57  ;;  %777 = vmatpush.bf16.msrb.mxu0 %v1263_v56  ;;  %v1218_v49 = vld [vmem:[#allocation7 + $0x80] sm:$0xf]  ;;  %v1155_v50 = vor.u32 %v1447_v48, %v1154_v47  ;;  %v1463_v51 = vld [vmem:[#allocation7 + $0x84] sm:$0xf0]  ;;  %v1462_v56 = vld [vmem:[#allocation7 + $0x84] sm:$0xf] }
  0xbf   : > { %764 = vmatpush.bf16.msrb.mxu1 %v1199_v52  ;;  %v1446_v52 = vld [vmem:[#allocation7 + $0x4] sm:$0xf]  ;;  %v1219_v54 = vor.u32 %v1463_v51, %v1218_v49  ;;  %v1220_v57 = vld [vmem:[#allocation7 + $0x88] sm:$0xf0]  ;;  %v1338_v58 = vld [vmem:[#allocation5 + $0x70] sm:$0xf] }
  0xc0   : > { %739 = vmatpush.bf16.msra.mxu2 %v1187_v63  ;;  %752 = vmatpush.bf16.msra.mxu3 %v1251_v3  ;;  %v1159_v55 = vor.u32 %v1446_v52, %v1156_v53  ;;  %v1440_v35 = vld [vmem:[#allocation5 + $0xd4] sm:$0xf]  ;;  %v1388_v36 = vld [vmem:[#allocation5 + $0xd8] sm:$0xf0]  ;;  %v1423_v39 = vld [vmem:[#allocation5 + $0x44] sm:$0xf0] }
  0xc1   : > { %v1391_v41 = vor.u32 %v1440_v35, %v1388_v36  ;;  %v1316_v44 = vld [vmem:[#allocation5 + $0x48] sm:$0xf0]  ;;  %v1438_v45 = vld [vmem:[#allocation5 + $0xc4] sm:$0xf]  ;;  %v1306_v52 = vld [vmem:[#allocation5 + $0x30] sm:$0xf] }
  0xc2   : > { %v1421_v53 = vld [vmem:[#allocation5 + $0x34] sm:$0xf0] }
 0x13a   : > { %v380_v60 = vpop.f32.mrf.mxu0 }
 0x13b   : > { %v383_v61 = vmax.f32 %v380_v60, 0.0  ;;  %v1188_v60 = vld [vmem:[#allocation7 + $0x48] sm:$0xf0] }
 0x13d   : > { %1151 = vmatmul.msk.f32.vlgmr.msra.gmra.mxu1 %vm385_vm7, %v383_v61  ;;  %v1470_v61 = vld [vmem:[#allocation7 + $0xc4] sm:$0xf] }
 0x1ba   : > { %v410_v4 = vpop.f32.mrf.mxu1 }
 0x1bb   : > { %v414_v6 = vrot.slane %v410_v4, 1 }
 0x1bd   : > { %v416_v11 = vadd.f32 %v414_v6, %v410_v4  ;;  %v1191_v4 = vor.u32 %v1454_v59, %v1188_v60  ;;  %v1255_v6 = vor.u32 %v1470_v61, %v1252_v62  ;;  %v1223_v59 = vor.u32 %v1462_v56, %v1220_v57  ;;  %v1429_v60 = vld [vmem:[#allocation5 + $0x74] sm:$0xf0]  ;;  %v1402_v61 = vld [vmem:[#allocation5 + $0xf0] sm:$0xf] }
 0x1be   : > { %v1445_v62 = vld [vmem:[#allocation5 + $0xf4] sm:$0xf0]  ;;  %v1339_v63 = vor.u32 %v1429_v60, %v1338_v58  ;;  %v1307_v56 = vor.u32 %v1421_v53, %v1306_v52  ;;  %v1420_v58 = vld [vmem:[#allocation5 + $0x34] sm:$0xf] }
 0x1bf   : > { %v417_v12 = vsub.f32 0.0, %v416_v11  ;;  %765 = vmatpush.bf16.msrb.mxu1 %v1191_v4  ;;  %v1178_v11 = vld [vmem:[#allocation7 + $0x30] sm:$0xf]  ;;  %778 = vmatpush.bf16.msrb.mxu0 %v1255_v6  ;;  %v1403_v3 = vor.u32 %v1445_v62, %v1402_v61  ;;  %v1428_v4 = vld [vmem:[#allocation5 + $0x74] sm:$0xf] }
 0x1c0   : > { %v1340_v6 = vld [vmem:[#allocation5 + $0x78] sm:$0xf0]  ;;  %v1437_v57 = vld [vmem:[#allocation5 + $0xb4] sm:$0xf0]  ;;  %v1436_v62 = vld [vmem:[#allocation5 + $0xb4] sm:$0xf] }
 0x1c1   : > { %v418_v13 = vmul.f32 1.442695, %v417_v12  ;;  %v1453_v12 = vld [vmem:[#allocation7 + $0x34] sm:$0xf0] }
 0x1c3   : > { %1561 = vpow2.f32 %v418_v13  ;;  %v1242_v13 = vld [vmem:[#allocation7 + $0xb0] sm:$0xf]  ;;  %779 = vmatpush.bf16.msrb.mxu0 %v1247_v22  ;;  %v1332_v22 = vld [vmem:[#allocation5 + $0x68] sm:$0xf0] }
 0x1c4   : > { %v1335_v24 = vor.u32 %v1426_v20, %v1332_v22  ;;  %v1290_v20 = vld [vmem:[#allocation5 + $0x10] sm:$0xf] }
 0x1c7   : > { %780 = vmatpush.bf16.msrb.mxu0 %v1239_v34  ;;  %v1324_v34 = vld [vmem:[#allocation5 + $0x58] sm:$0xf0] }
 0x1c9   : > { %v1562_v14 = vpop.eup %1561 }
 0x1ca   : > { %v420_v15 = vadd.f32 1.0, %v1562_v14  ;;  %v1179_v14 = vor.u32 %v1453_v12, %v1178_v11  ;;  %v1444_v11 = vld [vmem:[#allocation5 + $0xf4] sm:$0xf]  ;;  %v1343_v12 = vor.u32 %v1428_v4, %v1340_v6  ;;  %v1419_v6 = vld [vmem:[#allocation5 + $0x24] sm:$0xf0] }
 0x1cb   : > { %781 = vmatpush.bf16.msrb.mxu0 %v1231_v46  ;;  %v1380_v46 = vld [vmem:[#allocation5 + $0xc8] sm:$0xf0] }
 0x1cc   : > { %1563 = vrcp.f32 %v420_v15  ;;  %v1469_v15 = vld [vmem:[#allocation7 + $0xb4] sm:$0xf0]  ;;  %740 = vmatpush.bf16.msra.mxu2 %v1179_v14  ;;  %v1330_v14 = vld [vmem:[#allocation5 + $0x60] sm:$0xf]  ;;  %v1383_v51 = vor.u32 %v1438_v45, %v1380_v46 }
 0x1cf   : > { %782 = vmatpush.bf16.msrb.mxu0 %v1223_v59  ;;  %v1308_v59 = vld [vmem:[#allocation5 + $0x38] sm:$0xf0] }
 0x1d0   : > { %741 = vmatpush.bf16.msra.mxu2 %v1171_v26  ;;  %v1322_v26 = vld [vmem:[#allocation5 + $0x50] sm:$0xf]  ;;  %v1311_v61 = vor.u32 %v1420_v58, %v1308_v59 }
 0x1d1   : > { %v1323_v32 = vor.u32 %v1425_v27, %v1322_v26  ;;  %v1416_v27 = vld [vmem:[#allocation5 + $0x14] sm:$0xf] }
 0x1d2   : > { %v1564_v16 = vpop.eup %1563 }
 0x1d3   : > { %v422_v17 = vperm.slane %v1564_v16, 0  ;;  %v1452_v16 = vld [vmem:[#allocation7 + $0x34] sm:$0xf] }
 0x1d4   : > { %742 = vmatpush.bf16.msra.mxu2 %v1163_v38  ;;  %v1314_v38 = vld [vmem:[#allocation5 + $0x40] sm:$0xf] }
 0x1d5   : > { %439 = vperm.xlu1 %1556, %v422_v17   ;;  %433 = vperm.xlu0 %1555, %v422_v17   ;;  %v1315_v47 = vor.u32 %v1423_v39, %v1314_v38 }
 0x1d6   : > { %427 = vperm.xlu2 %1554, %v422_v17  }
 0x1d8   : > { %743 = vmatpush.bf16.msra.mxu2 %v1155_v50 }
 0x1dc   : > { %948 = vmatpush.bf16.msrb.mxu2 %v1339_v63  ;;  %v1372_v63 = vld [vmem:[#allocation5 + $0xb8] sm:$0xf0] }
 0x1dd   : > { %1558 = vset.pattern.permute.xlu0 %v443_v18  ;;  %v1375_v4 = vor.u32 %v1436_v62, %v1372_v63 }
 0x1de   : > { %1557 = vset.pattern.permute.xlu2 %v443_v18  ;;  %v1243_v18 = vor.u32 %v1469_v15, %v1242_v13  ;;  %v1404_v13 = vld [vmem:[#allocation5 + $0xf8] sm:$0xf0]  ;;  %v1427_v15 = vld [vmem:[#allocation5 + $0x64] sm:$0xf0] }
 0x1e0   : > { %753 = vmatpush.bf16.msra.mxu3 %v1243_v18  ;;  %v1394_v18 = vld [vmem:[#allocation5 + $0xe0] sm:$0xf] }
 0x1e4   : > { %754 = vmatpush.bf16.msra.mxu3 %v1235_v30  ;;  %v1441_v30 = vld [vmem:[#allocation5 + $0xd4] sm:$0xf0] }
 0x1e5   : > { %v1387_v33 = vor.u32 %v1441_v30, %v1386_v29  ;;  %v1432_v29 = vld [vmem:[#allocation5 + $0x94] sm:$0xf]  ;;  %v1291_v30 = vor.u32 %v1417_v23, %v1290_v20 }
 0x1e6   : > { %445 = vperm.xlu2 %1557, %v422_v17   ;;  %v1180_v17 = vld [vmem:[#allocation7 + $0x38] sm:$0xf0] }
 0x1e7   : > { %v1183_v19 = vor.u32 %v1452_v16, %v1180_v17  ;;  %v1407_v16 = vor.u32 %v1444_v11, %v1404_v13  ;;  %v1331_v17 = vor.u32 %v1427_v15, %v1330_v14  ;;  %v1362_v11 = vld [vmem:[#allocation5 + $0xa0] sm:$0xf]  ;;  %v1300_v15 = vld [vmem:[#allocation5 + $0x28] sm:$0xf0] }
 0x1e8   : > { %755 = vmatpush.bf16.msra.mxu3 %v1227_v42  ;;  %v1439_v42 = vld [vmem:[#allocation5 + $0xc4] sm:$0xf0] }
 0x1e9   : > { %766 = vmatpush.bf16.msrb.mxu1 %v1183_v19  ;;  %v1443_v19 = vld [vmem:[#allocation5 + $0xe4] sm:$0xf0]  ;;  %987 = vmatpush.bf16.msra.mxu0 %v1407_v16  ;;  %v1379_v48 = vor.u32 %v1439_v42, %v1378_v40  ;;  %v1434_v16 = vld [vmem:[#allocation5 + $0xa4] sm:$0xf] }
 0x1ea   : > { %v1395_v21 = vor.u32 %v1443_v19, %v1394_v18  ;;  %949 = vmatpush.bf16.msrb.mxu2 %v1331_v17  ;;  %v1364_v19 = vld [vmem:[#allocation5 + $0xa8] sm:$0xf0]  ;;  %v1414_v42 = vld [vmem:[#allocation5 + $0x4] sm:$0xf] }
 0x1eb   : > { %v1367_v22 = vor.u32 %v1434_v16, %v1364_v19 }
 0x1ec   : > { %756 = vmatpush.bf16.msra.mxu3 %v1219_v54  ;;  %v1370_v54 = vld [vmem:[#allocation5 + $0xb0] sm:$0xf] }
 0x1ed   : > { %767 = vmatpush.bf16.msrb.mxu1 %v1175_v31  ;;  %v1424_v31 = vld [vmem:[#allocation5 + $0x54] sm:$0xf]  ;;  %988 = vmatpush.bf16.msra.mxu0 %v1399_v28  ;;  %v1371_v60 = vor.u32 %v1437_v57, %v1370_v54  ;;  %v1292_v28 = vld [vmem:[#allocation5 + $0x18] sm:$0xf0] }
 0x1ee   : > { %v1327_v37 = vor.u32 %v1424_v31, %v1324_v34  ;;  %950 = vmatpush.bf16.msrb.mxu2 %v1323_v32  ;;  %v1356_v32 = vld [vmem:[#allocation5 + $0x98] sm:$0xf0]  ;;  %v1415_v34 = vld [vmem:[#allocation5 + $0x4] sm:$0xf0]  ;;  %v1295_v39 = vor.u32 %v1416_v27, %v1292_v28 }
 0x1ef   : > { %v1359_v40 = vor.u32 %v1432_v29, %v1356_v32 }
 0x1f0   : > { %961 = vmatpush.bf16.msrb.mxu3 %v1403_v3  ;;  %v1298_v3 = vld [vmem:[#allocation5 + $0x20] sm:$0xf] }
 0x1f1   : > { %768 = vmatpush.bf16.msrb.mxu1 %v1167_v43  ;;  %v1422_v43 = vld [vmem:[#allocation5 + $0x44] sm:$0xf]  ;;  %989 = vmatpush.bf16.msra.mxu0 %v1391_v41  ;;  %v1299_v13 = vor.u32 %v1419_v6, %v1298_v3  ;;  %v1431_v41 = vld [vmem:[#allocation5 + $0x84] sm:$0xf0] }
 0x1f2   : > { %v1319_v49 = vor.u32 %v1422_v43, %v1316_v44  ;;  %951 = vmatpush.bf16.msrb.mxu2 %v1315_v47  ;;  %v1430_v47 = vld [vmem:[#allocation5 + $0x84] sm:$0xf] }
 0x1f4   : > { %962 = vmatpush.bf16.msrb.mxu3 %v1395_v21 }
 0x1f5   : > { %769 = vmatpush.bf16.msrb.mxu1 %v1159_v55  ;;  %990 = vmatpush.bf16.msra.mxu0 %v1383_v51 }
 0x1f6   : > { %952 = vmatpush.bf16.msrb.mxu2 %v1307_v56 }
 0x1f8   : > { %963 = vmatpush.bf16.msrb.mxu3 %v1387_v33  ;;  %v1282_v33 = vld [vmem:[#allocation5] sm:$0xf] }
 0x1f9   : > { %974 = vmatpush.bf16.msra.mxu1 %v1343_v12  ;;  %v1435_v12 = vld [vmem:[#allocation5 + $0xa4] sm:$0xf0]  ;;  %991 = vmatpush.bf16.msra.mxu0 %v1375_v4 }
 0x1fa   : > { %v1363_v14 = vor.u32 %v1435_v12, %v1362_v11  ;;  %953 = vmatpush.bf16.msrb.mxu2 %v1299_v13 }
 0x1fc   : > { %964 = vmatpush.bf16.msrb.mxu3 %v1379_v48 }
 0x1fd   : > { %975 = vmatpush.bf16.msra.mxu1 %v1335_v24  ;;  %v1354_v24 = vld [vmem:[#allocation5 + $0x90] sm:$0xf]  ;;  %992 = vmatpush.bf16.msra.mxu0 %v1367_v22 }
 0x1fe   : > { %v1355_v31 = vor.u32 %v1433_v25, %v1354_v24  ;;  %954 = vmatpush.bf16.msrb.mxu2 %v1291_v30 }
 0x200   : > { %965 = vmatpush.bf16.msrb.mxu3 %v1371_v60 }
 0x201   : > { %976 = vmatpush.bf16.msra.mxu1 %v1327_v37  ;;  %993 = vmatpush.bf16.msra.mxu0 %v1359_v40 }
 0x204   : > { %966 = vmatpush.bf16.msrb.mxu3 %v1363_v14 }
 0x205   : > { %977 = vmatpush.bf16.msra.mxu1 %v1319_v49  ;;  %v1283_v49 = vor.u32 %v1415_v34, %v1282_v33 }
 0x207   : > { %955 = vmatpush.bf16.msrb.mxu2 %v1283_v49 }
 0x208   : > { %967 = vmatpush.bf16.msrb.mxu3 %v1355_v31 }
 0x209   : > { %978 = vmatpush.bf16.msra.mxu1 %v1311_v61  ;;  %v1744_v61 = vmov 32.0  }
 0x20a   : > { %1565 = vrcp.f32 %v1744_v61 }
 0x230   : > { %v428_v50 = vpop.permute.xlu2 %427 }
 0x231   : > { %v447_v55 = vmul.f32 %v428_v50, %v1887_v0  ;;  %v1418_v0 = vld [vmem:[#allocation5 + $0x24] sm:$0xf]  ;;  %v448_v26 = vmul.f32 %v428_v50, %v1889_v1  ;;  %v1346_v1 = vld [vmem:[#allocation5 + $0x80] sm:$0xf] }
 0x232   : > { %v1303_v18 = vor.u32 %v1418_v0, %v1300_v15  ;;  %v1347_v50 = vor.u32 %v1431_v41, %v1346_v1  ;;  %v1566_v15 = vpop.eup %1565 }
 0x233   : > { %v1935_v17 = vadd.f32 1.0, %v447_v55  ;;  %v1944_v48 = vadd.f32 1.0, %v448_v26  ;;  %v482_v23 = vmul.f32 32.0, %v1566_v15  ;;  %vm486_vm8 = vweird.f32 %v1566_v15 }
 0x234   : > { %979 = vmatpush.bf16.msra.mxu1 %v1303_v18  ;;  %968 = vmatpush.bf16.msrb.mxu3 %v1347_v50 }
 0x235   : > { %v483_v30 = vsub.f32 1.0, %v482_v23 }
 0x238   : > { %980 = vmatpush.bf16.msra.mxu1 %v1295_v39 }
 0x240   : > { %v446_v21 = vpop.permute.xlu2 %445 }
 0x241   : > { %v453_v35 = vmul.f32 %v446_v21, %v1905_v9  ;;  %v454_v36 = vmul.f32 %v446_v21, %v1907_v10  ;;  %v1284_v9 = vld [vmem:[#allocation5 + $0x8] sm:$0xf0] }
 0x242   : > { %v1348_v10 = vld [vmem:[#allocation5 + $0x88] sm:$0xf0] }
 0x243   : > { %v1351_v54 = vor.u32 %v1430_v47, %v1348_v10 }
 0x245   : > { %994 = vmatpush.bf16.msra.mxu0 %v1351_v54 }
 0x247   : > { %v440_v37 = vpop.permute.xlu1 %439  ;;  %v434_v38 = vpop.permute.xlu0 %433 }
 0x248   : > { %v451_v43 = vmul.f32 %v440_v37, %v1891_v2  ;;  %v452_v44 = vmul.f32 %v440_v37, %v1897_v5  ;;  %v449_v45 = vmul.f32 %v434_v38, %v1901_v7  ;;  %v450_v46 = vmul.f32 %v434_v38, %v1903_v8 }
 0x249   : > { %v1954_v5 = vadd.f32 1.0, %v453_v35  ;;  %v1956_v7 = vadd.f32 1.0, %v454_v36  ;;  %v1287_v8 = vor.u32 %v1414_v42, %v1284_v9  ;;  %v484_v37 = vmul.f32 %v1566_v15, %v483_v30 }
 0x24a   : > { %v1946_v51 = vadd.f32 1.0, %v451_v43  ;;  %v1948_v52 = vadd.f32 1.0, %v452_v44  ;;  %v1950_v53 = vadd.f32 1.0, %v449_v45  ;;  %v1952_v2 = vadd.f32 1.0, %v450_v46 }
 0x24b   : > { %981 = vmatpush.bf16.msra.mxu1 %v1287_v8  ;;  %v485_v40 = vadd.f32 %v1566_v15, %v484_v37 }
 0x24c   : > { %v492_v55 = vmax.f32 %v1935_v17, %v1946_v51  ;;  %v501_v56 = vmax.f32 %v1944_v48, %v1948_v52  ;;  %v463_v57 = vadd.f32 %v1950_v53, %v1935_v17  ;;  %v472_v58 = vadd.f32 %v1952_v2, %v1944_v48 }
 0x24d   : > { %v493_v59 = vmax.f32 %v1950_v53, %v1954_v5  ;;  %v502_v60 = vmax.f32 %v1952_v2, %v1956_v7  ;;  %v487_v42 = vsel %vm486_vm8, %v1566_v15, %v485_v40 }
 0x24e   : > { %v464_v62 = vadd.f32 %v463_v57, %v1946_v51  ;;  %v473_v63 = vadd.f32 %v472_v58, %v1948_v52 }
 0x24f   : > { %v494_v3 = vmax.f32 %v492_v55, %v493_v59  ;;  %v503_v4 = vmax.f32 %v501_v56, %v502_v60 }
 0x250   : > { %v465_v6 = vadd.f32 %v464_v62, %v1954_v5  ;;  %v474_v11 = vadd.f32 %v473_v63, %v1956_v7 }
 0x251   : > { %v495_v12 = vrot.slane %v494_v3, 4  ;;  %v504_v13 = vrot.slane %v503_v4, 4 }
 0x252   : > { %v466_v14 = vrot.slane %v465_v6, 4  ;;  %v475_v0 = vrot.slane %v474_v11, 4 }
 0x253   : > { %v496_v16 = vmax.f32 %v494_v3, %v495_v12  ;;  %v505_v18 = vmax.f32 %v503_v4, %v504_v13 }
 0x254   : > { %v467_v21 = vadd.f32 %v466_v14, %v465_v6  ;;  %v476_v22 = vadd.f32 %v475_v0, %v474_v11 }
 0x255   : > { %v497_v19 = vrot.slane %v496_v16, 2  ;;  %v506_v20 = vrot.slane %v505_v18, 2 }
 0x256   : > { %v468_v28 = vrot.slane %v467_v21, 2  ;;  %v477_v29 = vrot.slane %v476_v22, 2 }
 0x257   : > { %v498_v24 = vmax.f32 %v496_v16, %v497_v19  ;;  %v507_v25 = vmax.f32 %v505_v18, %v506_v20 }
 0x258   : > { %v469_v35 = vadd.f32 %v468_v28, %v467_v21  ;;  %v478_v36 = vadd.f32 %v477_v29, %v476_v22 }
 0x259   : > { %v499_v26 = vrot.slane %v498_v24, 1  ;;  %v508_v27 = vrot.slane %v507_v25, 1 }
 0x25a   : > { %v470_v38 = vrot.slane %v469_v35, 1  ;;  %v479_v39 = vrot.slane %v478_v36, 1 }
 0x25b   : > { %v500_v31 = vmax.f32 %v498_v24, %v499_v26  ;;  %v509_v32 = vmax.f32 %v507_v25, %v508_v27 }
 0x25c   : > { %v471_v1 = vadd.f32 %v470_v38, %v469_v35  ;;  %v480_v41 = vadd.f32 %v479_v39, %v478_v36 }
 0x25d   : > { %v510_v33 = vpack.c.bf16 %v500_v31, %v500_v31  ;;  %v511_v34 = vpack.c.bf16 %v509_v32, %v509_v32 }
 0x25e   : > { %v488_v43 = vmul.f32 %v487_v42, %v471_v1  ;;  %v489_v44 = vmul.f32 %v487_v42, %v480_v41 }
 0x25f   : > { %744 = vmatmul.bf16.vlgmr.msra.gmra.mxu2 %v510_v33  ;;  %757 = vmatmul.bf16.vlgmr.msra.gmra.mxu3 %v511_v34 }
 0x260   : > { %770 = vmatmul.bf16.vlgmr.msrb.gmra.mxu1 %v510_v33  ;;  %783 = vmatmul.bf16.vlgmr.msrb.gmra.mxu0 %v511_v34  ;;  %v490_v45 = vpack.c.bf16 %v488_v43, %v488_v43  ;;  %v491_v46 = vpack.c.bf16 %v489_v44, %v489_v44 }
 0x26f   : > { %956 = vmatmul.bf16.vlgmr.msrb.gmra.mxu2 %v490_v45  ;;  %969 = vmatmul.bf16.vlgmr.msrb.gmra.mxu3 %v491_v46 }
 0x270   : > { %982 = vmatmul.bf16.vlgmr.msra.gmra.mxu1 %v490_v45  ;;  %995 = vmatmul.bf16.vlgmr.msra.gmra.mxu0 %v491_v46 }
 0x2dd   : > { %v771_v9 = vpop.f32.mrf.mxu1  ;;  %v784_v47 = vpop.f32.mrf.mxu0 }
 0x2de   : > { %v785_v56 = vadd.f32 %v784_v47, %v771_v9 }
 0x2e2   : > { %v745_v10 = vpop.f32.mrf.mxu2  ;;  %v758_v49 = vpop.f32.mrf.mxu3 }
 0x2e3   : > { %v759_v61 = vadd.f32 %v758_v49, %v745_v10 }
 0x2e5   : > { %v773_v50 = vpop.f32.mrf.mxu1  ;;  %v786_v8 = vpop.f32.mrf.mxu0 }
 0x2ea   : > { %v747_v54 = vpop.f32.mrf.mxu2  ;;  %v760_v55 = vpop.f32.mrf.mxu3 }
 0x2ed   : > { %v983_v57 = vpop.f32.mrf.mxu1  ;;  %v996_v58 = vpop.f32.mrf.mxu0 }
 0x2ee   : > { %v984_v59 = vadd.f32 %v983_v57, %v785_v56 }
 0x2f0   : > { %v997_v60 = vadd.f32 %v996_v58, %v984_v59 }
 0x2f2   : > { %v1001_v62 = vsub.f32 0.0, %v997_v60  ;;  %v957_v63 = vpop.f32.mrf.mxu2  ;;  %v970_v3 = vpop.f32.mrf.mxu3 }
 0x2f3   : > { %v958_v4 = vadd.f32 %v957_v63, %v759_v61 }
 0x2f4   : > { %v1004_v6 = vmul.f32 1.442695, %v1001_v62 }
 0x2f5   : > { %v971_v11 = vadd.f32 %v970_v3, %v958_v4  ;;  %v985_v12 = vpop.f32.mrf.mxu1  ;;  %v998_v13 = vpop.f32.mrf.mxu0 }
 0x2f6   : > { %1567 = vpow2.f32 %v1004_v6 }
 0x2f7   : > { %v1000_v14 = vsub.f32 0.0, %v971_v11 }
 0x2f9   : > { %v1002_v0 = vmul.f32 1.442695, %v1000_v14 }
 0x2fa   : > { %v959_v15 = vpop.f32.mrf.mxu2  ;;  %v972_v16 = vpop.f32.mrf.mxu3 }
 0x2fb   : > { %1569 = vpow2.f32 %v1002_v0 }
 0x2fc   : > { %v1568_v18 = vpop.eup %1567 }
 0x2fd   : > { %v1007_v19 = vadd.f32 1.0, %v1568_v18 }
 0x2ff   : > { %1571 = vrcp.f32 %v1007_v19 }
 0x301   : > { %v1570_v20 = vpop.eup %1569 }
 0x302   : > { %v1006_v21 = vadd.f32 1.0, %v1570_v20 }
 0x304   : > { %1573 = vrcp.f32 %v1006_v21 }
 0x305   : > { %v1572_v22 = vpop.eup %1571 }
 0x306   : > { %v1011_v23 = vperm.slane %v1572_v22, 0 }
 0x308   : > { %v1013_v24 = vadd.f32 %v1011_v23, %v1944_v48  ;;  %v1015_v25 = vadd.f32 %v1011_v23, %v1952_v2  ;;  %v1017_v26 = vadd.f32 %v1011_v23, %v1948_v52  ;;  %v1019_v27 = vadd.f32 %v1011_v23, %v1956_v7 }
 0x30a   : > { %v1574_v28 = vpop.eup %1573  ;;  %1021 = vst [vmem:[%s277_s24 + $0x8] sm:$0xff] %v1013_v24 }
 0x30b   : > { %1023 = vst [vmem:[%s277_s24 + $0x18] sm:$0xff] %v1015_v25  ;;  %v1010_v29 = vperm.slane %v1574_v28, 0 }
 0x30c   : > { %1025 = vst [vmem:[%s277_s24 + $0x28] sm:$0xff] %v1017_v26 }
 0x30d   : > { %1027 = vst [vmem:[%s277_s24 + $0x38] sm:$0xff] %v1019_v27  ;;  %v1012_v48 = vadd.f32 %v1010_v29, %v1935_v17  ;;  %v1014_v52 = vadd.f32 %v1010_v29, %v1950_v53  ;;  %v1016_v2 = vadd.f32 %v1010_v29, %v1946_v51  ;;  %v1018_v7 = vadd.f32 %v1010_v29, %v1954_v5 }
 0x30f   : > { %1020 = vst [vmem:[%s277_s24] sm:$0xff] %v1012_v48 }
 0x310   : > { %1022 = vst [vmem:[%s277_s24 + $0x10] sm:$0xff] %v1014_v52 }
 0x311   : > { %1024 = vst [vmem:[%s277_s24 + $0x20] sm:$0xff] %v1016_v2 }
 0x312   : > { %1026 = vst [vmem:[%s277_s24 + $0x30] sm:$0xff] %v1018_v7 }
 0x313   : > { %1692 = shalt.err (!%p1689_p10)
}
 0x314   : > { %s1745_s8 = smov 256   ;;  %s1746_s6 = smov 16  }
 0x315   : > { %1489 = dma.vmem_to_hbm [thread:$0]  (%p1843_p3), %s1042_s22, 1024, %s1044_s29, %s1029_s13, %s1745_s8, %s1745_s8, %s1746_s6  }
 0x316 PF: > { %s1058_s26 = sand.u32 1, %s1723_s18   ;;  %p2028_p12 = scmp.ge.s32.totalorder %s1735_s21, 2 }
 0x317   : > { %s1059_s7 = scalar_lea.sflag [#allocation4], %s1058_s26 }
 0x318   : > { %p1503_p13 = pnand %p2028_p12, %p1812_p6 }
 0x31a   : > { %p1504_p0 = pneg %p1503_p13 }
 0x31c   : > { %1718 = dma.done.wait (%p1504_p0), %s1059_s7, 1024  }
 0x31d   : > { %1720 = vsyncadd (%p1504_p0), %s1059_s7, 4294966272  ;;  %p19_p5 = scmp.ge.s32.totalorder %s1833_s14, 4   ;;  %s2029_s18 = smov %s1727_s19 }
 0x31e   : > { %s2030_s19 = smov %s1731_s20  ;;  %s2031_s20 = smov %s1849_s23 }
 0x31f   : > { %s2032_s21 = smov %s1833_s14  ;;  %21 = sbr.rel (!%p19_p5) target bundleno = 6 (0x6), region = 93 }
 0x324   :  { %1065 = vsyncpa [#allocation3], 1 }
 0x325   :  { %1067 = vsyncpa [#allocation3 + $0x1], 1 }
 0x326   :  { %1068 = vsyncpa [#allocation6], 1 }
 0x327   :  { %1069 = vsyncpa [#allocation4], 1 }
 0x328   :  { %1071 = vsyncpa [#allocation4 + $0x1], 1 }

</bundles_post_ra>
